<compile_context>
chip_gen: v7x
topology: tpu7x:2x2x1
jax: 0.10.0
libtpu: 0.0.40
codegen_flags: <defaults>
</compile_context>

<pallas_src>
import functools

import jax
import jax.numpy as jnp
from jax.experimental import pallas as pl
from jax.experimental.pallas import tpu as pltpu


# ----------------------------- helpers ---------------------------------------

def _round_up(x, m):
    return ((x + m - 1) // m) * m


def _apply_activation(h, activation):
    if activation == "relu":
        return jnp.maximum(h, 0.0)
    elif activation == "tanh":
        return jnp.tanh(h)
    elif activation == "sigmoid":
        return jax.nn.sigmoid(h)
    else:
        raise ValueError("should be a valid activation function")


# ----------------------------- Pallas kernel ---------------------------------

def bayes_mlp_kernel(x_ref, w1_mu_ref, w1_eps_ref, wh_mu_ref, wh_eps_ref,
                     wl_mu_ref, wl_eps_ref, sig_last_ref,
                     b_mu_ref, b_eps_ref, bl_mu_ref, bl_eps_ref,
                     o_ref,
                     w1_s, wh_s, wl_s, b_s, bl_s,
                     *, activation, n_hidden, sigma):
    f32 = jnp.float32
    bf16 = jnp.bfloat16

    # ---- sample all weights/biases ONCE (first grid step) into VMEM scratch --
    # Formed in f32 (v5e-friendly, full-precision noise add), stored bf16 for
    # the MXU.  Scratch persists across grid steps; later tiles reuse it.
    @pl.when(pl.program_id(0) == 0)
    def _sample():
        w1_s[...] = (w1_mu_ref[...] + sigma * w1_eps_ref[...]).astype(bf16)
        wh_s[...] = (wh_mu_ref[...] + sigma * wh_eps_ref[...]).astype(bf16)
        sig_row = sig_last_ref[...]                       # (1, Npad) f32, 0 on pad
        wl_s[...] = (wl_mu_ref[...] + sig_row * wl_eps_ref[...]).astype(bf16)
        b_s[...] = b_mu_ref[...] + sigma * b_eps_ref[...]
        bl_s[...] = bl_mu_ref[...] + sig_row * bl_eps_ref[...]

    # ---- first layer: (TM, Cin) @ (Cin, L) + (1, L) ---------------------------
    h = jnp.dot(x_ref[...].astype(bf16), w1_s[...],
                preferred_element_type=f32) + b_s[0:1, :]   # f32 (TM, L)

    # Dropout(p) with p == 0 is the identity (p > 0 rejected in the wrapper).
    # TODO(synk): training-mode dropout (p > 0) would need an in-kernel PRNG mask.

    # ---- hidden layers: n_hidden x (BayesLinear(L, L) -> activation) ---------
    # Static unroll is fine for small n_hidden; switch to lax.fori_loop(...,
    # unroll=True) over wh_s if n_hidden grows beyond ~4.
    for i in range(n_hidden):
        h = jnp.dot(h.astype(bf16), wh_s[i],
                    preferred_element_type=f32) + b_s[i + 1:i + 2, :]
        h = _apply_activation(h, activation)                # f32 (VPU/EUP)

    # ---- last layer, lane-padded to N_pad (pad cols are exactly zero) --------
    out = jnp.dot(h.astype(bf16), wl_s[...],
                  preferred_element_type=f32) + bl_s[...]
    o_ref[...] = out.astype(o_ref.dtype)                    # lane-dense 128 store


# ----------------------------- wrapper ----------------------------------------

def bayes_mlp_forward(x, params, eps, *, activation, p=0.0, tm=None):
    """x: (M, Cin) f32.  Returns (M, Cout) f32.

    params / eps are produced by init_bayes_params / sample_eps below.
    tm: batch tile (rows per grid step). Defaults to one tile covering the
    whole (8-aligned) batch up to 256 rows, so small/medium batches run as a
    single grid step (best on single-TC v5e/v6e and fills the v6e MXU M axis).
    """
    if p > 0.0:
        # TODO(synk): dropout with p>0 not implemented in-kernel.
        raise NotImplementedError("Dropout p>0 is not supported by this kernel")
    assert activation in ("relu", "tanh", "sigmoid")

    M, cin = x.shape
    cin_p, L = params["w1_mu"].shape
    assert cin == cin_p
    n_hidden = params["wh_mu"].shape[0]
    n_pad = params["wl_mu"].shape[1]
    cout = params["cout"]

    if tm is None:
        tm = min(256, _round_up(M, 8))       # collapse grid to 1 step if possible
    m_pad = _round_up(M, tm)
    if m_pad != M:
        x = jnp.pad(x, ((0, m_pad - M), (0, 0)))

    grid = (m_pad // tm,)
    kernel = functools.partial(bayes_mlp_kernel, activation=activation,
                               n_hidden=n_hidden, sigma=params["sigma"])

    in_specs = [
        pl.BlockSpec((tm, cin), lambda i: (i, 0)),               # x
        pl.BlockSpec((cin, L), lambda i: (0, 0)),                # w1_mu
        pl.BlockSpec((cin, L), lambda i: (0, 0)),                # w1_eps
        pl.BlockSpec((n_hidden, L, L), lambda i: (0, 0, 0)),     # wh_mu
        pl.BlockSpec((n_hidden, L, L), lambda i: (0, 0, 0)),     # wh_eps
        pl.BlockSpec((L, n_pad), lambda i: (0, 0)),              # wl_mu
        pl.BlockSpec((L, n_pad), lambda i: (0, 0)),              # wl_eps
        pl.BlockSpec((1, n_pad), lambda i: (0, 0)),              # sig_last (mask)
        pl.BlockSpec((1 + n_hidden, L), lambda i: (0, 0)),       # packed bias mu
        pl.BlockSpec((1 + n_hidden, L), lambda i: (0, 0)),       # packed bias eps
        pl.BlockSpec((1, n_pad), lambda i: (0, 0)),              # bl_mu
        pl.BlockSpec((1, n_pad), lambda i: (0, 0)),              # bl_eps
    ]
    out_specs = pl.BlockSpec((tm, n_pad), lambda i: (i, 0))

    scratch_shapes = [
        pltpu.VMEM((cin, L), jnp.bfloat16),                      # sampled W1
        pltpu.VMEM((n_hidden, L, L), jnp.bfloat16),              # sampled Wh stack
        pltpu.VMEM((L, n_pad), jnp.bfloat16),                    # sampled WL
        pltpu.VMEM((1 + n_hidden, L), jnp.float32),              # sampled biases
        pltpu.VMEM((1, n_pad), jnp.float32),                     # sampled last bias
    ]

    out = pl.pallas_call(
        kernel,
        out_shape=jax.ShapeDtypeStruct((m_pad, n_pad), jnp.float32),
        grid=grid,
        in_specs=in_specs,
        out_specs=out_specs,
        scratch_shapes=scratch_shapes,
        # "arbitrary": grid steps run sequentially on one TC so the step-0
        # weight-sampling guard is valid for any grid size.
        compiler_params=pltpu.CompilerParams(
            dimension_semantics=("arbitrary",)),
    )(x, params["w1_mu"], eps["w1"], params["wh_mu"], eps["wh"],
      params["wl_mu"], eps["wl"], params["sig_last"],
      params["b_mu"], eps["b"], params["bl_mu"], eps["bl"])

    return out[:M, :cout]


# --------------------------- parameter init / sampling ------------------------

def init_bayes_params(key, in_channels, out_channels, L, n_hidden, prior_sigma):
    """torchbnn-style init, stored directly in x @ W (in, out) layout (f32).
    mu ~ U(-1/sqrt(in), 1/sqrt(in)); log_sigma = log(prior_sigma) (constant),
    so sigma = prior_sigma is hoisted to a compile-time scalar."""
    assert n_hidden >= 1
    n_pad = _round_up(max(out_channels, 128), 128)
    k_w1, k_wh, k_wl, k_b1, k_bh, k_bl = jax.random.split(key, 6)

    std_first = 1.0 / jnp.sqrt(jnp.float32(in_channels))
    std_hid = 1.0 / jnp.sqrt(jnp.float32(L))

    w1_mu = jax.random.uniform(k_w1, (in_channels, L), jnp.float32,
                               -std_first, std_first)
    wh_mu = jax.random.uniform(k_wh, (n_hidden, L, L), jnp.float32,
                               -std_hid, std_hid)
    wl_mu_core = jax.random.uniform(k_wl, (L, out_channels), jnp.float32,
                                    -std_hid, std_hid)
    wl_mu = jnp.zeros((L, n_pad), jnp.float32).at[:, :out_channels].set(
        wl_mu_core)

    b1_mu = jax.random.uniform(k_b1, (1, L), jnp.float32, -std_first, std_first)
    bh_mu = jax.random.uniform(k_bh, (n_hidden, L), jnp.float32,
                               -std_hid, std_hid)
    b_mu = jnp.concatenate([b1_mu, bh_mu], axis=0)             # (1+H, L) f32

    bl_mu_core = jax.random.uniform(k_bl, (1, out_channels), jnp.float32,
                                    -std_hid, std_hid)
    bl_mu = jnp.zeros((1, n_pad), jnp.float32).at[:, :out_channels].set(
        bl_mu_core)

    # Masked sigma row for the padded last layer: sigma on real cols, 0 on pad.
    col = jnp.arange(n_pad)[None, :]
    sig_last = jnp.where(col < out_channels, jnp.float32(prior_sigma), 0.0)

    return dict(w1_mu=w1_mu, wh_mu=wh_mu, wl_mu=wl_mu,
                b_mu=b_mu, bl_mu=bl_mu, sig_last=sig_last,
                sigma=float(prior_sigma), cout=out_channels)


def sample_eps(key, params):
    """Per-forward standard-normal perturbations (the only thing that changes
    between forwards), stored f32 so the noise add happens at full precision."""
    cin, L = params["w1_mu"].shape
    H = params["wh_mu"].shape[0]
    n_pad = params["wl_mu"].shape[1]
    k1, k2, k3, k4, k5 = jax.random.split(key, 5)
    return dict(
        w1=jax.random.normal(k1, (cin, L), jnp.float32),
        wh=jax.random.normal(k2, (H, L, L), jnp.float32),
        wl=jax.random.normal(k3, (L, n_pad), jnp.float32),
        b=jax.random.normal(k4, (1 + H, L), jnp.float32),
        bl=jax.random.normal(k5, (1, n_pad), jnp.float32),
    )


# ----------------------------------- main --------------------------------------

if __name__ == "__main__":
    activation = "relu"
    in_channels = 16
    out_channels = 8
    L = 128                 # small hidden width for the example
    n_hidden = 2
    p = 0.0                 # dropout prob -> identity
    prior_sigma = 0.01
    batch = 16              # small stacked batch; still one lane-aligned tile

    key = jax.random.PRNGKey(0)
    k_x, k_init, k_eps = jax.random.split(key, 3)

    x = jax.random.normal(k_x, (batch, in_channels), jnp.float32)
    params = init_bayes_params(k_init, in_channels, out_channels, L,
                               n_hidden, prior_sigma)
    eps = sample_eps(k_eps, params)     # one weight sample for this forward

    out = bayes_mlp_forward(x, params, eps, activation=activation, p=p)
    out = jax.block_until_ready(out)

    # -------- pure-JAX f32 reference of the same sampled forward --------------
    sigma = params["sigma"]
    w1_f = params["w1_mu"] + sigma * eps["w1"]
    b1_f = params["b_mu"][0:1] + sigma * eps["b"][0:1]
    h_ref = x @ w1_f + b1_f
    for i in range(n_hidden):
        wi_f = params["wh_mu"][i] + sigma * eps["wh"][i]
        bi_f = params["b_mu"][i + 1:i + 2] + sigma * eps["b"][i + 1:i + 2]
        h_ref = _apply_activation(h_ref @ wi_f + bi_f, activation)
    wl_f = params["wl_mu"] + params["sig_last"] * eps["wl"]
    bl_f = params["bl_mu"] + params["sig_last"] * eps["bl"]
    ref = (h_ref @ wl_f + bl_f)[:, :out_channels]

    assert out.shape == (batch, out_channels)
    # bf16 matmul operands (f32 accumulation) -> looser tolerance than pure f32.
    assert jnp.allclose(out, ref, atol=5e-2, rtol=5e-2), (
        float(jnp.max(jnp.abs(out - ref))))

    print("KERNEL_OK")
</pallas_src>

<mosaic_0001>
module attributes {stable_mosaic.version = 11 : i64} {
  func.func @bayes_mlp_kernel(%arg0: i32, %arg1: memref<16x16xf32, #tpu.memory_space<vmem>>, %arg2: memref<16x128xf32, #tpu.memory_space<vmem>>, %arg3: memref<16x128xf32, #tpu.memory_space<vmem>>, %arg4: memref<2x128x128xf32, #tpu.memory_space<vmem>>, %arg5: memref<2x128x128xf32, #tpu.memory_space<vmem>>, %arg6: memref<128x128xf32, #tpu.memory_space<vmem>>, %arg7: memref<128x128xf32, #tpu.memory_space<vmem>>, %arg8: memref<1x128xf32, #tpu.memory_space<vmem>>, %arg9: memref<3x128xf32, #tpu.memory_space<vmem>>, %arg10: memref<3x128xf32, #tpu.memory_space<vmem>>, %arg11: memref<1x128xf32, #tpu.memory_space<vmem>>, %arg12: memref<1x128xf32, #tpu.memory_space<vmem>>, %arg13: memref<16x128xf32, #tpu.memory_space<vmem>>, %arg14: memref<16x128xbf16, #tpu.memory_space<vmem>>, %arg15: memref<2x128x128xbf16, #tpu.memory_space<vmem>>, %arg16: memref<128x128xbf16, #tpu.memory_space<vmem>>, %arg17: memref<3x128xf32, #tpu.memory_space<vmem>>, %arg18: memref<1x128xf32, #tpu.memory_space<vmem>>) attributes {dimension_semantics = [#tpu.dimension_semantics<arbitrary>], iteration_bounds = array<i64: 1>, scalar_prefetch = 0 : i64, scratch_operands = 5 : i64, tpu.core_type = #tpu.core_type<tc>, window_params = [{transform_indices = @transform_0, window_bounds = array<i64: 16, 16>}, {pipeline_mode = #tpu.pipeline_mode<synchronous>, transform_indices = @transform_1, window_bounds = array<i64: 16, 128>}, {pipeline_mode = #tpu.pipeline_mode<synchronous>, transform_indices = @transform_2, window_bounds = array<i64: 16, 128>}, {pipeline_mode = #tpu.pipeline_mode<synchronous>, transform_indices = @transform_3, window_bounds = array<i64: 2, 128, 128>}, {pipeline_mode = #tpu.pipeline_mode<synchronous>, transform_indices = @transform_4, window_bounds = array<i64: 2, 128, 128>}, {pipeline_mode = #tpu.pipeline_mode<synchronous>, transform_indices = @transform_5, window_bounds = array<i64: 128, 128>}, {pipeline_mode = #tpu.pipeline_mode<synchronous>, transform_indices = @transform_6, window_bounds = array<i64: 128, 128>}, {pipeline_mode = #tpu.pipeline_mode<synchronous>, transform_indices = @transform_7, window_bounds = array<i64: 1, 128>}, {pipeline_mode = #tpu.pipeline_mode<synchronous>, transform_indices = @transform_8, window_bounds = array<i64: 3, 128>}, {pipeline_mode = #tpu.pipeline_mode<synchronous>, transform_indices = @transform_9, window_bounds = array<i64: 3, 128>}, {pipeline_mode = #tpu.pipeline_mode<synchronous>, transform_indices = @transform_10, window_bounds = array<i64: 1, 128>}, {pipeline_mode = #tpu.pipeline_mode<synchronous>, transform_indices = @transform_11, window_bounds = array<i64: 1, 128>}, {transform_indices = @transform_12, window_bounds = array<i64: 16, 128>}]} {
    %c0_i32 = arith.constant 0 : i32
    %0 = arith.cmpi eq, %arg0, %c0_i32 : i32
    %1 = arith.extui %0 : i1 to i32
    %c0_i32_0 = arith.constant 0 : i32
    %2 = arith.cmpi ne, %1, %c0_i32_0 : i32
    scf.if %2 {
      %c0_25 = arith.constant 0 : index
      %c0_26 = arith.constant 0 : index
      %35 = vector.load %arg2[%c0_25, %c0_26] : memref<16x128xf32, #tpu.memory_space<vmem>>, vector<16x128xf32>
      %c0_27 = arith.constant 0 : index
      %c0_28 = arith.constant 0 : index
      %36 = vector.load %arg3[%c0_27, %c0_28] : memref<16x128xf32, #tpu.memory_space<vmem>>, vector<16x128xf32>
      %cst_29 = arith.constant 0.00999999977 : f32
      %37 = vector.broadcast %cst_29 : f32 to vector<16x128xf32>
      %38 = arith.mulf %37, %36 : vector<16x128xf32>
      %39 = arith.addf %35, %38 : vector<16x128xf32>
      %40 = arith.truncf %39 : vector<16x128xf32> to vector<16x128xbf16>
      %c0_30 = arith.constant 0 : index
      %c0_31 = arith.constant 0 : index
      %41 = vector.load %arg14[%c0_30, %c0_31] : memref<16x128xbf16, #tpu.memory_space<vmem>>, vector<16x128xbf16>
      tpu.vector_store %arg14[%c0_30, %c0_31], %40 {strides = array<i32>} : memref<16x128xbf16, #tpu.memory_space<vmem>>, vector<16x128xbf16>,
      %c0_32 = arith.constant 0 : index
      %c0_33 = arith.constant 0 : index
      %c0_34 = arith.constant 0 : index
      %42 = vector.load %arg4[%c0_32, %c0_33, %c0_34] : memref<2x128x128xf32, #tpu.memory_space<vmem>>, vector<2x128x128xf32>
      %c0_35 = arith.constant 0 : index
      %c0_36 = arith.constant 0 : index
      %c0_37 = arith.constant 0 : index
      %43 = vector.load %arg5[%c0_35, %c0_36, %c0_37] : memref<2x128x128xf32, #tpu.memory_space<vmem>>, vector<2x128x128xf32>
      %cst_38 = arith.constant 0.00999999977 : f32
      %44 = vector.broadcast %cst_38 : f32 to vector<2x128x128xf32>
      %45 = arith.mulf %44, %43 : vector<2x128x128xf32>
      %46 = arith.addf %42, %45 : vector<2x128x128xf32>
      %47 = arith.truncf %46 : vector<2x128x128xf32> to vector<2x128x128xbf16>
      %c0_39 = arith.constant 0 : index
      %c0_40 = arith.constant 0 : index
      %c0_41 = arith.constant 0 : index
      %48 = vector.load %arg15[%c0_39, %c0_40, %c0_41] : memref<2x128x128xbf16, #tpu.memory_space<vmem>>, vector<2x128x128xbf16>
      tpu.vector_store %arg15[%c0_39, %c0_40, %c0_41], %47 {strides = array<i32>} : memref<2x128x128xbf16, #tpu.memory_space<vmem>>, vector<2x128x128xbf16>,
      %c0_42 = arith.constant 0 : index
      %c0_43 = arith.constant 0 : index
      %49 = vector.load %arg8[%c0_42, %c0_43] : memref<1x128xf32, #tpu.memory_space<vmem>>, vector<1x128xf32>
      %c0_44 = arith.constant 0 : index
      %c0_45 = arith.constant 0 : index
      %50 = vector.load %arg6[%c0_44, %c0_45] : memref<128x128xf32, #tpu.memory_space<vmem>>, vector<128x128xf32>
      %c0_46 = arith.constant 0 : index
      %c0_47 = arith.constant 0 : index
      %51 = vector.load %arg7[%c0_46, %c0_47] : memref<128x128xf32, #tpu.memory_space<vmem>>, vector<128x128xf32>
      %52 = vector.broadcast %49 : vector<1x128xf32> to vector<128x128xf32>
      %53 = arith.mulf %52, %51 : vector<128x128xf32>
      %54 = arith.addf %50, %53 : vector<128x128xf32>
      %55 = arith.truncf %54 : vector<128x128xf32> to vector<128x128xbf16>
      %c0_48 = arith.constant 0 : index
      %c0_49 = arith.constant 0 : index
      %56 = vector.load %arg16[%c0_48, %c0_49] : memref<128x128xbf16, #tpu.memory_space<vmem>>, vector<128x128xbf16>
      tpu.vector_store %arg16[%c0_48, %c0_49], %55 {strides = array<i32>} : memref<128x128xbf16, #tpu.memory_space<vmem>>, vector<128x128xbf16>,
      %c0_50 = arith.constant 0 : index
      %c0_51 = arith.constant 0 : index
      %57 = vector.load %arg9[%c0_50, %c0_51] : memref<3x128xf32, #tpu.memory_space<vmem>>, vector<3x128xf32>
      %c0_52 = arith.constant 0 : index
      %c0_53 = arith.constant 0 : index
      %58 = vector.load %arg10[%c0_52, %c0_53] : memref<3x128xf32, #tpu.memory_space<vmem>>, vector<3x128xf32>
      %cst_54 = arith.constant 0.00999999977 : f32
      %59 = vector.broadcast %cst_54 : f32 to vector<3x128xf32>
      %60 = arith.mulf %59, %58 : vector<3x128xf32>
      %61 = arith.addf %57, %60 : vector<3x128xf32>
      %c0_55 = arith.constant 0 : index
      %c0_56 = arith.constant 0 : index
      %62 = vector.load %arg17[%c0_55, %c0_56] : memref<3x128xf32, #tpu.memory_space<vmem>>, vector<3x128xf32>
      tpu.vector_store %arg17[%c0_55, %c0_56], %61 {strides = array<i32>} : memref<3x128xf32, #tpu.memory_space<vmem>>, vector<3x128xf32>,
      %c0_57 = arith.constant 0 : index
      %c0_58 = arith.constant 0 : index
      %63 = vector.load %arg11[%c0_57, %c0_58] : memref<1x128xf32, #tpu.memory_space<vmem>>, vector<1x128xf32>
      %c0_59 = arith.constant 0 : index
      %c0_60 = arith.constant 0 : index
      %64 = vector.load %arg12[%c0_59, %c0_60] : memref<1x128xf32, #tpu.memory_space<vmem>>, vector<1x128xf32>
      %65 = arith.mulf %49, %64 : vector<1x128xf32>
      %66 = arith.addf %63, %65 : vector<1x128xf32>
      %c0_61 = arith.constant 0 : index
      %c0_62 = arith.constant 0 : index
      %67 = vector.load %arg18[%c0_61, %c0_62] : memref<1x128xf32, #tpu.memory_space<vmem>>, vector<1x128xf32>
      tpu.vector_store %arg18[%c0_61, %c0_62], %66 {strides = array<i32>} : memref<1x128xf32, #tpu.memory_space<vmem>>, vector<1x128xf32>,
    } else {
    }
    %c0 = arith.constant 0 : index
    %c0_1 = arith.constant 0 : index
    %3 = vector.load %arg1[%c0, %c0_1] : memref<16x16xf32, #tpu.memory_space<vmem>>, vector<16x16xf32>
    %4 = arith.truncf %3 : vector<16x16xf32> to vector<16x16xbf16>
    %c0_2 = arith.constant 0 : index
    %c0_3 = arith.constant 0 : index
    %5 = vector.load %arg14[%c0_2, %c0_3] : memref<16x128xbf16, #tpu.memory_space<vmem>>, vector<16x128xbf16>
    %cst = arith.constant dense<0.000000e+00> : vector<16x128xf32>
    %6 = tpu.matmul %4, %5, %cst {dimension_numbers = #tpu.dot_dimension_numbers<[1], [0], [0], [1], [0, 0, 1, 1], [], []>} : vector<16x16xbf16>, vector<16x128xbf16>, vector<16x128xf32> -> vector<16x128xf32>
    %c0_4 = arith.constant 0 : index
    %c0_5 = arith.constant 0 : index
    %7 = vector.load %arg17[%c0_4, %c0_5] : memref<3x128xf32, #tpu.memory_space<vmem>>, vector<1x128xf32>
    %8 = vector.broadcast %7 : vector<1x128xf32> to vector<16x128xf32>
    %9 = arith.addf %6, %8 : vector<16x128xf32>
    %10 = arith.truncf %9 : vector<16x128xf32> to vector<16x128xbf16>
    %c0_6 = arith.constant 0 : index
    %c0_7 = arith.constant 0 : index
    %c0_8 = arith.constant 0 : index
    %11 = vector.load %arg15[%c0_6, %c0_7, %c0_8] : memref<2x128x128xbf16, #tpu.memory_space<vmem>>, vector<1x128x128xbf16>
    %12 = vector.shape_cast %11 : vector<1x128x128xbf16> to vector<128x128xbf16>
    %cst_9 = arith.constant dense<0.000000e+00> : vector<16x128xf32>
    %13 = tpu.matmul %10, %12, %cst_9 {dimension_numbers = #tpu.dot_dimension_numbers<[1], [0], [0], [1], [0, 0, 1, 1], [], []>} : vector<16x128xbf16>, vector<128x128xbf16>, vector<16x128xf32> -> vector<16x128xf32>
    %c1 = arith.constant 1 : index
    %c0_10 = arith.constant 0 : index
    %14 = vector.load %arg17[%c1, %c0_10] : memref<3x128xf32, #tpu.memory_space<vmem>>, vector<1x128xf32>
    %15 = vector.broadcast %14 : vector<1x128xf32> to vector<16x128xf32>
    %16 = arith.addf %13, %15 : vector<16x128xf32>
    %cst_11 = arith.constant 0.000000e+00 : f32
    %17 = vector.broadcast %cst_11 : f32 to vector<16x128xf32>
    %18 = arith.maximumf %16, %17 : vector<16x128xf32>
    %19 = arith.truncf %18 : vector<16x128xf32> to vector<16x128xbf16>
    %c1_12 = arith.constant 1 : index
    %c0_13 = arith.constant 0 : index
    %c0_14 = arith.constant 0 : index
    %20 = vector.load %arg15[%c1_12, %c0_13, %c0_14] : memref<2x128x128xbf16, #tpu.memory_space<vmem>>, vector<1x128x128xbf16>
    %21 = vector.shape_cast %20 : vector<1x128x128xbf16> to vector<128x128xbf16>
    %cst_15 = arith.constant dense<0.000000e+00> : vector<16x128xf32>
    %22 = tpu.matmul %19, %21, %cst_15 {dimension_numbers = #tpu.dot_dimension_numbers<[1], [0], [0], [1], [0, 0, 1, 1], [], []>} : vector<16x128xbf16>, vector<128x128xbf16>, vector<16x128xf32> -> vector<16x128xf32>
    %c2 = arith.constant 2 : index
    %c0_16 = arith.constant 0 : index
    %23 = vector.load %arg17[%c2, %c0_16] : memref<3x128xf32, #tpu.memory_space<vmem>>, vector<1x128xf32>
    %24 = vector.broadcast %23 : vector<1x128xf32> to vector<16x128xf32>
    %25 = arith.addf %22, %24 : vector<16x128xf32>
    %cst_17 = arith.constant 0.000000e+00 : f32
    %26 = vector.broadcast %cst_17 : f32 to vector<16x128xf32>
    %27 = arith.maximumf %25, %26 : vector<16x128xf32>
    %28 = arith.truncf %27 : vector<16x128xf32> to vector<16x128xbf16>
    %c0_18 = arith.constant 0 : index
    %c0_19 = arith.constant 0 : index
    %29 = vector.load %arg16[%c0_18, %c0_19] : memref<128x128xbf16, #tpu.memory_space<vmem>>, vector<128x128xbf16>
    %cst_20 = arith.constant dense<0.000000e+00> : vector<16x128xf32>
    %30 = tpu.matmul %28, %29, %cst_20 {dimension_numbers = #tpu.dot_dimension_numbers<[1], [0], [0], [1], [0, 0, 1, 1], [], []>} : vector<16x128xbf16>, vector<128x128xbf16>, vector<16x128xf32> -> vector<16x128xf32>
    %c0_21 = arith.constant 0 : index
    %c0_22 = arith.constant 0 : index
    %31 = vector.load %arg18[%c0_21, %c0_22] : memref<1x128xf32, #tpu.memory_space<vmem>>, vector<1x128xf32>
    %32 = vector.broadcast %31 : vector<1x128xf32> to vector<16x128xf32>
    %33 = arith.addf %30, %32 : vector<16x128xf32>
    %c0_23 = arith.constant 0 : index
    %c0_24 = arith.constant 0 : index
    %34 = vector.load %arg13[%c0_23, %c0_24] : memref<16x128xf32, #tpu.memory_space<vmem>>, vector<16x128xf32>
    tpu.vector_store %arg13[%c0_23, %c0_24], %33 {strides = array<i32>} : memref<16x128xf32, #tpu.memory_space<vmem>>, vector<16x128xf32>,
    return
  }
  func.func @transform_0(%arg0: i32) -> (i32, i32) {
    %c0_i32 = arith.constant 0 : i32
    %c0_i32_0 = arith.constant 0 : i32
    return %arg0, %c0_i32 : i32, i32
  }
  func.func @transform_1(%arg0: i32) -> (i32, i32) {
    %c0_i32 = arith.constant 0 : i32
    %c0_i32_0 = arith.constant 0 : i32
    %c0_i32_1 = arith.constant 0 : i32
    return %c0_i32, %c0_i32_0 : i32, i32
  }
  func.func @transform_2(%arg0: i32) -> (i32, i32) {
    %c0_i32 = arith.constant 0 : i32
    %c0_i32_0 = arith.constant 0 : i32
    %c0_i32_1 = arith.constant 0 : i32
    return %c0_i32, %c0_i32_0 : i32, i32
  }
  func.func @transform_3(%arg0: i32) -> (i32, i32, i32) {
    %c0_i32 = arith.constant 0 : i32
    %c0_i32_0 = arith.constant 0 : i32
    %c0_i32_1 = arith.constant 0 : i32
    %c0_i32_2 = arith.constant 0 : i32
    return %c0_i32, %c0_i32_0, %c0_i32_1 : i32, i32, i32
  }
  func.func @transform_4(%arg0: i32) -> (i32, i32, i32) {
    %c0_i32 = arith.constant 0 : i32
    %c0_i32_0 = arith.constant 0 : i32
    %c0_i32_1 = arith.constant 0 : i32
    %c0_i32_2 = arith.constant 0 : i32
    return %c0_i32, %c0_i32_0, %c0_i32_1 : i32, i32, i32
  }
  func.func @transform_5(%arg0: i32) -> (i32, i32) {
    %c0_i32 = arith.constant 0 : i32
    %c0_i32_0 = arith.constant 0 : i32
    %c0_i32_1 = arith.constant 0 : i32
    return %c0_i32, %c0_i32_0 : i32, i32
  }
  func.func @transform_6(%arg0: i32) -> (i32, i32) {
    %c0_i32 = arith.constant 0 : i32
    %c0_i32_0 = arith.constant 0 : i32
    %c0_i32_1 = arith.constant 0 : i32
    return %c0_i32, %c0_i32_0 : i32, i32
  }
  func.func @transform_7(%arg0: i32) -> (i32, i32) {
    %c0_i32 = arith.constant 0 : i32
    %c0_i32_0 = arith.constant 0 : i32
    %c0_i32_1 = arith.constant 0 : i32
    return %c0_i32, %c0_i32_0 : i32, i32
  }
  func.func @transform_8(%arg0: i32) -> (i32, i32) {
    %c0_i32 = arith.constant 0 : i32
    %c0_i32_0 = arith.constant 0 : i32
    %c0_i32_1 = arith.constant 0 : i32
    return %c0_i32, %c0_i32_0 : i32, i32
  }
  func.func @transform_9(%arg0: i32) -> (i32, i32) {
    %c0_i32 = arith.constant 0 : i32
    %c0_i32_0 = arith.constant 0 : i32
    %c0_i32_1 = arith.constant 0 : i32
    return %c0_i32, %c0_i32_0 : i32, i32
  }
  func.func @transform_10(%arg0: i32) -> (i32, i32) {
    %c0_i32 = arith.constant 0 : i32
    %c0_i32_0 = arith.constant 0 : i32
    %c0_i32_1 = arith.constant 0 : i32
    return %c0_i32, %c0_i32_0 : i32, i32
  }
  func.func @transform_11(%arg0: i32) -> (i32, i32) {
    %c0_i32 = arith.constant 0 : i32
    %c0_i32_0 = arith.constant 0 : i32
    %c0_i32_1 = arith.constant 0 : i32
    return %c0_i32, %c0_i32_0 : i32, i32
  }
  func.func @transform_12(%arg0: i32) -> (i32, i32) {
    %c0_i32 = arith.constant 0 : i32
    %c0_i32_0 = arith.constant 0 : i32
    return %arg0, %c0_i32 : i32, i32
  }
}

</mosaic_0001>

<bundles_post_ra>
// kernel: tpu_custom_call.1
= control target key start
LH: loop header
LB: loop body
LE: loop exit
PB: predicated region body
PF: predicated region fallthrough
CT: control target
= control target key end

     0   :  { %17 = vsyncpa [#allocation8], 0  ;;  %s1243_s0 = inlined_call_operand.hbm [shape: f32[16,16], index: 0, kind: input, shape index: {}]   ;;  %s1244_s1 = inlined_call_operand.hbm [shape: f32[16,128], index: 1, kind: input, shape index: {}]   ;;  %s1245_s2 = inlined_call_operand.hbm [shape: f32[16,128], index: 2, kind: input, shape index: {}]   ;;  %s1246_s3 = inlined_call_operand.hbm [shape: f32[2,128,128], index: 3, kind: input, shape index: {}]   ;;  %s1247_s4 = inlined_call_operand.hbm [shape: f32[2,128,128], index: 4, kind: input, shape index: {}]   ;;  %s1248_s5 = inlined_call_operand.hbm [shape: f32[128,128], index: 5, kind: input, shape index: {}]   ;;  %s1249_s6 = inlined_call_operand.hbm [shape: f32[128,128], index: 6, kind: input, shape index: {}]   ;;  %s1250_s7 = inlined_call_operand.vmem [shape: f32[1,128], index: 7, kind: input, shape index: {}]   ;;  %s1251_s8 = inlined_call_operand.vmem [shape: f32[3,128], index: 8, kind: input, shape index: {}]   ;;  %s1252_s9 = inlined_call_operand.vmem [shape: f32[3,128], index: 9, kind: input, shape index: {}]   ;;  %s1253_s10 = inlined_call_operand.vmem [shape: f32[1,128], index: 10, kind: input, shape index: {}]   ;;  %s1254_s11 = inlined_call_operand.vmem [shape: f32[1,128], index: 11, kind: input, shape index: {}]   ;;  %s1255_s12 = inlined_call_operand.hbm [shape: f32[16,128], index: 12, kind: output, shape index: {}]  }
   0x1   :  { %18 = vsyncpa [#allocation11], 0 }
   0x2   :  { %19 = vsyncpa [#allocation14], 0 }
   0x3   :  { %20 = vsyncpa [#allocation17], 0 }
   0x4   :  { %21 = vsyncpa [#allocation9], 0  ;;  %s955_s21 = smov [#allocation10]   ;;  %s956_s23 = smov [#allocation13]  }
   0x5   :  { %s39_s22 = sshll.u32 %s955_s21, 4  ;;  %s63_s24 = sshll.u32 %s956_s23, 4  ;;  %s40_s22 = int_to_ptr.vmem [resolvable:$true] %s39_s22  ;;  %s1032_s24 = int_to_ptr.vmem [resolvable:$true] %s63_s24 }
   0x6   :  { %s769_s27 = scalar_lea.hbm %s1244_s1, 256 }
   0x7   :  { %p770_p0 = scmp.ne.s32.totalorder %s1244_s1, %s769_s27  ;;  %p773_p1 = scmp.lt.u32.totalorder %s769_s27, %s1244_s1 }
   0x9   :  { %p775_p2 = pnand %p773_p1, %p770_p0 }
   0xb   :  { %778 = shalt.err (!%p775_p2)
}
   0xc   :  { %s779_s14 = scalar_lea.vmem %s40_s22, 256  ;;  %p784_p4 = scmp.lt.s32.totalorder %s40_s22, %s40_s22 }
   0xd   :  { %p780_p3 = scmp.ne.s32.totalorder %s40_s22, %s779_s14  ;;  %p785_p5 = scmp.lt.s32.totalorder %s779_s14, %s779_s14 }
   0xf   :  { %p786_p6 = por %p785_p5, %p784_p4 }
  0x11   :  { %p787_p7 = pnand %p786_p6, %p780_p3 }
  0x13   :  { %790 = shalt.err (!%p787_p7)
}
  0x14   :  { %s957_s15 = smov 128   ;;  %s958_s16 = smov 8  }
  0x15   :  { %45 = dma.hbm_to_vmem [thread:$0]  %s1244_s1, 256, %s40_s22, [#allocation11], %s957_s15, %s957_s15, %s958_s16  }
  0x16   :  { %s791_s21 = scalar_lea.hbm %s1246_s3, 4096 }
  0x17   :  { %p792_p8 = scmp.ne.s32.totalorder %s1246_s3, %s791_s21  ;;  %p795_p9 = scmp.lt.u32.totalorder %s791_s21, %s1246_s3 }
  0x19   :  { %p797_p10 = pnand %p795_p9, %p792_p8 }
  0x1b   :  { %800 = shalt.err (!%p797_p10)
}
  0x1c   :  { %s801_s28 = scalar_lea.vmem %s1032_s24, 4096  ;;  %p806_p12 = scmp.lt.s32.totalorder %s1032_s24, %s1032_s24 }
  0x1d   :  { %p802_p11 = scmp.ne.s32.totalorder %s1032_s24, %s801_s28  ;;  %p807_p13 = scmp.lt.s32.totalorder %s801_s28, %s801_s28 }
  0x1f   :  { %p808_p0 = por %p807_p13, %p806_p12 }
  0x21   :  { %p809_p1 = pnand %p808_p0, %p802_p11 }
  0x23   :  { %812 = shalt.err (!%p809_p1)
}
  0x24   :  { %69 = dma.hbm_to_vmem [thread:$0]  %s1246_s3, 4096, %s1032_s24, [#allocation14], %s957_s15, %s957_s15, %s958_s16  }
  0x25   :  { %s959_s29 = smov [#allocation16]   ;;  %s960_s13 = smov [#allocation7]  }
  0x26   :  { %s87_s30 = sshll.u32 %s959_s29, 4  ;;  %s27_s14 = sshll.u32 %s960_s13, 4  ;;  %s88_s30 = int_to_ptr.vmem [resolvable:$true] %s87_s30  ;;  %s1069_s14 = int_to_ptr.vmem [resolvable:$true] %s27_s14 }
  0x27   :  { %s813_s19 = scalar_lea.hbm %s1248_s5, 2048 }
  0x28   :  { %p814_p2 = scmp.ne.s32.totalorder %s1248_s5, %s813_s19  ;;  %p817_p3 = scmp.lt.u32.totalorder %s813_s19, %s1248_s5 }
  0x2a   :  { %p819_p4 = pnand %p817_p3, %p814_p2 }
  0x2c   :  { %822 = shalt.err (!%p819_p4)
}
  0x2d   :  { %s823_s3 = scalar_lea.vmem %s88_s30, 2048  ;;  %p828_p6 = scmp.lt.s32.totalorder %s88_s30, %s88_s30 }
  0x2e   :  { %p824_p5 = scmp.ne.s32.totalorder %s88_s30, %s823_s3  ;;  %p829_p7 = scmp.lt.s32.totalorder %s823_s3, %s823_s3 }
  0x30   :  { %p830_p8 = por %p829_p7, %p828_p6 }
  0x32   :  { %p831_p9 = pnand %p830_p8, %p824_p5 }
  0x34   :  { %834 = shalt.err (!%p831_p9)
}
  0x35   :  { %93 = dma.hbm_to_vmem [thread:$0]  %s1248_s5, 2048, %s88_s30, [#allocation17], %s957_s15, %s957_s15, %s958_s16  }
  0x36   :  { %s835_s1 = scalar_lea.hbm %s1243_s0, 256 }
  0x37   :  { %p836_p10 = scmp.ne.s32.totalorder %s1243_s0, %s835_s1  ;;  %p839_p11 = scmp.lt.u32.totalorder %s835_s1, %s1243_s0 }
  0x39   :  { %p841_p12 = pnand %p839_p11, %p836_p10 }
  0x3b   :  { %844 = shalt.err (!%p841_p12)
}
  0x3c   :  { %s845_s18 = scalar_lea.vmem %s1069_s14, 256  ;;  %p850_p0 = scmp.lt.s32.totalorder %s1069_s14, %s1069_s14 }
  0x3d   :  { %p846_p13 = scmp.ne.s32.totalorder %s1069_s14, %s845_s18  ;;  %p851_p1 = scmp.lt.s32.totalorder %s845_s18, %s845_s18 }
  0x3f   :  { %p852_p2 = por %p851_p1, %p850_p0 }
  0x41   :  { %p853_p3 = pnand %p852_p2, %p846_p13 }
  0x43   :  { %856 = shalt.err (!%p853_p3)
}
  0x44   :  { %33 = dma.hbm_to_vmem [thread:$0]  %s1243_s0, 256, %s1069_s14, [#allocation8], %s957_s15, %s957_s15, %s958_s16  }
  0x45   :  { %s961_s19 = smov [#allocation12]   ;;  %s962_s21 = smov [#allocation15]  }
  0x46   :  { %s51_s20 = sshll.u32 %s961_s19, 4  ;;  %s75_s23 = sshll.u32 %s962_s21, 4  ;;  %s52_s20 = int_to_ptr.vmem [resolvable:$true] %s51_s20  ;;  %s1106_s23 = int_to_ptr.vmem [resolvable:$true] %s75_s23 }
  0x47   :  { %s857_s24 = scalar_lea.hbm %s1245_s2, 256 }
  0x48   :  { %p858_p4 = scmp.ne.s32.totalorder %s1245_s2, %s857_s24  ;;  %p861_p5 = scmp.lt.u32.totalorder %s857_s24, %s1245_s2 }
  0x4a   :  { %p863_p6 = pnand %p861_p5, %p858_p4 }
  0x4c   :  { %866 = shalt.err (!%p863_p6)
}
  0x4d   :  { %s867_s0 = scalar_lea.vmem %s52_s20, 256  ;;  %p872_p8 = scmp.lt.s32.totalorder %s52_s20, %s52_s20 }
  0x4e   :  { %p868_p7 = scmp.ne.s32.totalorder %s52_s20, %s867_s0  ;;  %p873_p9 = scmp.lt.s32.totalorder %s867_s0, %s867_s0 }
  0x50   :  { %p874_p10 = por %p873_p9, %p872_p8 }
  0x52   :  { %p875_p11 = pnand %p874_p10, %p868_p7 }
  0x54   :  { %878 = shalt.err (!%p875_p11)
}
  0x55   :  { %57 = dma.hbm_to_vmem [thread:$0]  %s1245_s2, 256, %s52_s20, [#allocation11], %s957_s15, %s957_s15, %s958_s16  }
  0x56   :  { %s879_s17 = scalar_lea.hbm %s1247_s4, 4096 }
  0x57   :  { %p880_p12 = scmp.ne.s32.totalorder %s1247_s4, %s879_s17  ;;  %p883_p13 = scmp.lt.u32.totalorder %s879_s17, %s1247_s4 }
  0x59   :  { %p885_p0 = pnand %p883_p13, %p880_p12 }
  0x5b   :  { %888 = shalt.err (!%p885_p0)
}
  0x5c   :  { %s889_s21 = scalar_lea.vmem %s1106_s23, 4096  ;;  %p894_p2 = scmp.lt.s32.totalorder %s1106_s23, %s1106_s23 }
  0x5d   :  { %p890_p1 = scmp.ne.s32.totalorder %s1106_s23, %s889_s21  ;;  %p895_p3 = scmp.lt.s32.totalorder %s889_s21, %s889_s21 }
  0x5f   :  { %p896_p4 = por %p895_p3, %p894_p2 }
  0x61   :  { %p897_p5 = pnand %p896_p4, %p890_p1 }
  0x63   :  { %900 = shalt.err (!%p897_p5)
}
  0x64   :  { %81 = dma.hbm_to_vmem [thread:$0]  %s1247_s4, 4096, %s1106_s23, [#allocation14], %s957_s15, %s957_s15, %s958_s16  }
  0x65   :  { %s963_s25 = smov [#allocation18]   ;;  %s901_s27 = scalar_lea.hbm %s1249_s6, 2048 }
  0x66   :  { %s99_s3 = sshll.u32 %s963_s25, 4  ;;  %p902_p6 = scmp.ne.s32.totalorder %s1249_s6, %s901_s27  ;;  %s100_s3 = int_to_ptr.vmem [resolvable:$true] %s99_s3 }
  0x67   :  { %p905_p7 = scmp.lt.u32.totalorder %s901_s27, %s1249_s6 }
  0x69   :  { %p907_p8 = pnand %p905_p7, %p902_p6 }
  0x6b   :  { %910 = shalt.err (!%p907_p8)
}
  0x6c   :  { %s911_s22 = scalar_lea.vmem %s100_s3, 2048  ;;  %p916_p10 = scmp.lt.s32.totalorder %s100_s3, %s100_s3 }
  0x6d   :  { %p912_p9 = scmp.ne.s32.totalorder %s100_s3, %s911_s22  ;;  %p917_p11 = scmp.lt.s32.totalorder %s911_s22, %s911_s22 }
  0x6f   :  { %p918_p12 = por %p917_p11, %p916_p10 }
  0x71   :  { %p919_p13 = pnand %p918_p12, %p912_p9 }
  0x73   :  { %922 = shalt.err (!%p919_p13)
}
  0x74   :  { %105 = dma.hbm_to_vmem [thread:$0]  %s1249_s6, 2048, %s100_s3, [#allocation17], %s957_s15, %s957_s15, %s958_s16  }
  0x75   :  { %945 = dma.done.wait [#allocation8], 256  }
  0x76   :  { %946 = vsyncadd [#allocation8], 4294967040 }
  0x77   :  { %947 = dma.done.wait [#allocation11], 512  }
  0x78   :  { %948 = vsyncadd [#allocation11], 4294966784 }
  0x79   :  { %949 = dma.done.wait [#allocation14], 8192  }
  0x7a   :  { %950 = vsyncadd [#allocation14], 4294959104 }
  0x7b   :  { %951 = dma.done.wait [#allocation17], 4096  }
  0x7c   :  { %952 = vsyncadd [#allocation17], 4294963200  ;;  %v964_v0 = vmov 0.0   ;;  %vm965_vm0 = vmmov 0   ;;  %v142_v1 = vld [vmem:[#allocation10] sm:$0xff]  ;;  %v144_v2 = vld [vmem:[#allocation12] sm:$0xff] }
  0x7d   :  { %691 = vmatprep.subr.bf16.mxu0 %v964_v0  ;;  %693 = vmatprep.mubr.msk.bf16.mxu0 %vm965_vm0, %v964_v0  ;;  %v143_v3 = vld [vmem:[#allocation10 + $0x8] sm:$0xff]  ;;  %v145_v4 = vld [vmem:[#allocation12 + $0x8] sm:$0xff]  ;;  %v146_v5 = vmul.f32 0.01, %v144_v2  ;;  %v409_v7 = vld [vmem:[#allocation7] sm:$0xff]  ;;  %vm418_vm1 = vcmask 130048  }
  0x7e   :  { %697 = vmatprep.subr.bf16.mxu1 %v964_v0  ;;  %713 = vmatprep.mubr.msk.bf16.mxu1 %vm965_vm0, %v964_v0  ;;  %v147_v6 = vmul.f32 0.01, %v145_v4  ;;  %v410_v8 = vld [vmem:[#allocation7 + $0x8] sm:$0xff]  ;;  %v152_v9 = vld [vmem:[#allocation13] sm:$0xff]  ;;  %v153_v12 = vld [vmem:[#allocation13 + $0x8] sm:$0xff] }
  0x7f   :  { %v184_v10 = vld [vmem:[#allocation15] sm:$0xff]  ;;  %v148_v11 = vadd.f32 %v146_v5, %v142_v1  ;;  %v185_v13 = vld [vmem:[#allocation15 + $0x8] sm:$0xff]  ;;  %v154_v15 = vld [vmem:[#allocation13 + $0x10] sm:$0xff]  ;;  %v411_v30 = vpack.c.bf16 %v410_v8, %v409_v7 }
  0x80   :  { %v216_v14 = vmul.f32 0.01, %v184_v10  ;;  %v149_v16 = vadd.f32 %v147_v6, %v143_v3  ;;  %v217_v17 = vmul.f32 0.01, %v185_v13  ;;  %v155_v18 = vld [vmem:[#allocation13 + $0x18] sm:$0xff]  ;;  %v186_v19 = vld [vmem:[#allocation15 + $0x10] sm:$0xff] }
  0x81   :  { %v187_v20 = vld [vmem:[#allocation15 + $0x18] sm:$0xff]  ;;  %v218_v22 = vmul.f32 0.01, %v186_v19  ;;  %v188_v24 = vld [vmem:[#allocation15 + $0x20] sm:$0xff]  ;;  %v189_v28 = vld [vmem:[#allocation15 + $0x28] sm:$0xff] }
  0x82   :  { %v248_v21 = vadd.f32 %v216_v14, %v152_v9  ;;  %v219_v23 = vmul.f32 0.01, %v187_v20  ;;  %v150_v25 = vpack.c.bf16 %v149_v16, %v148_v11  ;;  %v249_v26 = vadd.f32 %v217_v17, %v153_v12  ;;  %v156_v27 = vld [vmem:[#allocation13 + $0x20] sm:$0xff]  ;;  %v157_v33 = vld [vmem:[#allocation13 + $0x28] sm:$0xff]  ;;  %v190_v35 = vld [vmem:[#allocation15 + $0x30] sm:$0xff] }
  0x83   :  { %v220_v29 = vmul.f32 0.01, %v188_v24  ;;  %v250_v31 = vadd.f32 %v218_v22, %v154_v15  ;;  %v221_v34 = vmul.f32 0.01, %v189_v28  ;;  %v191_v36 = vld [vmem:[#allocation15 + $0x38] sm:$0xff]  ;;  %v158_v42 = vld [vmem:[#allocation13 + $0x30] sm:$0xff] }
  0x84   :  { %v251_v32 = vadd.f32 %v219_v23, %v155_v18  ;;  %692 = vmatpush3.bf16.msra.mxu0 %v150_v25  ;;  %v280_v37 = vpack.c.bf16 %v249_v26, %v248_v21  ;;  %v222_v38 = vmul.f32 0.01, %v190_v35  ;;  %v159_v43 = vld [vmem:[#allocation13 + $0x38] sm:$0xff]  ;;  %v223_v44 = vmul.f32 0.01, %v191_v36  ;;  %v192_v45 = vld [vmem:[#allocation15 + $0x40] sm:$0xff] }
  0x85   :  { %717 = vmatprep.subr.bf16.mxu0 %v964_v0  ;;  %v252_v40 = vadd.f32 %v220_v29, %v156_v27  ;;  %v253_v41 = vadd.f32 %v221_v34, %v157_v33  ;;  %v193_v46 = vld [vmem:[#allocation15 + $0x48] sm:$0xff]  ;;  %v224_v51 = vmul.f32 0.01, %v192_v45  ;;  %v160_v54 = vld [vmem:[#allocation13 + $0x40] sm:$0xff]  ;;  %v194_v58 = vld [vmem:[#allocation15 + $0x50] sm:$0xff] }
  0x86   :  { %698 = vmatpush3.bf16.msra.mxu1 %v280_v37  ;;  %v281_v39 = vpack.c.bf16 %v251_v32, %v250_v31  ;;  %v399_v47 = vld [vmem:[%s1251_s8] sm:$0x7]  ;;  %v254_v50 = vadd.f32 %v222_v38, %v158_v42  ;;  %v255_v53 = vadd.f32 %v223_v44, %v159_v43  ;;  %v225_v55 = vmul.f32 0.01, %v193_v46  ;;  %v195_v59 = vld [vmem:[#allocation15 + $0x58] sm:$0xff]  ;;  %v162_v2 = vld [vmem:[#allocation13 + $0x50] sm:$0xff] }
  0x87   :  { %694 = vmatmul.mubr.msk.bf16.vlgmr.msra.gmra.mrb[0].mxu0 %vm418_vm1, %v411_v30  ;;  %699 = vmatprep.subr.bf16.mxu1 %v964_v0  ;;  %v400_v48 = vld [vmem:[%s1252_s9] sm:$0x7]  ;;  %v282_v52 = vpack.c.bf16 %v253_v41, %v252_v40  ;;  %v256_v60 = vadd.f32 %v224_v51, %v160_v54  ;;  %v226_v63 = vmul.f32 0.01, %v194_v58  ;;  %v227_v1 = vmul.f32 0.01, %v195_v59 }
  0x88   :  { %v401_v49 = vmul.f32 0.01, %v400_v48  ;;  %733 = vmatprep.mubr.msk.bf16.mxu0 %vm965_vm0, %v964_v0  ;;  %v161_v57 = vld [vmem:[#allocation13 + $0x48] sm:$0xff]  ;;  %v283_v61 = vpack.c.bf16 %v255_v53, %v254_v50  ;;  %v163_v3 = vld [vmem:[#allocation13 + $0x58] sm:$0xff]  ;;  %v196_v8 = vld [vmem:[#allocation15 + $0x60] sm:$0xff] }
  0x89   :  { %v257_v62 = vadd.f32 %v225_v55, %v161_v57  ;;  %v258_v5 = vadd.f32 %v226_v63, %v162_v2  ;;  %v259_v6 = vadd.f32 %v227_v1, %v163_v3  ;;  %v197_v9 = vld [vmem:[#allocation15 + $0x68] sm:$0xff]  ;;  %v228_v10 = vmul.f32 0.01, %v196_v8  ;;  %v164_v12 = vld [vmem:[#allocation13 + $0x60] sm:$0xff]  ;;  %v198_v16 = vld [vmem:[#allocation15 + $0x70] sm:$0xff] }
  0x8a   :  { %700 = vmatpush3.bf16.msra.mxu1 %v281_v39  ;;  %v402_v56 = vadd.f32 %v401_v49, %v399_v47  ;;  %v229_v11 = vmul.f32 0.01, %v197_v9  ;;  %v165_v13 = vld [vmem:[#allocation13 + $0x68] sm:$0xff]  ;;  %v199_v17 = vld [vmem:[#allocation15 + $0x78] sm:$0xff]  ;;  %v230_v19 = vmul.f32 0.01, %v198_v16 }
  0x8b   :  { %701 = vmatprep.subr.bf16.mxu1 %v964_v0  ;;  %v284_v4 = vpack.c.bf16 %v257_v62, %v256_v60  ;;  %v285_v7 = vpack.c.bf16 %v259_v6, %v258_v5  ;;  %v260_v14 = vadd.f32 %v228_v10, %v164_v12  ;;  %v231_v20 = vmul.f32 0.01, %v199_v17  ;;  %v166_v21 = vld [vmem:[#allocation13 + $0x70] sm:$0xff]  ;;  %v167_v22 = vld [vmem:[#allocation13 + $0x78] sm:$0xff]  ;;  %v168_v26 = vld [vmem:[#allocation13 + $0x80] sm:$0xff] }
  0x8c   :  { %403 = vst [vmem:[#allocation5] sm:$0x7] %v402_v56  ;;  %v261_v15 = vadd.f32 %v229_v11, %v165_v13  ;;  %v262_v23 = vadd.f32 %v230_v19, %v166_v21  ;;  %v200_v27 = vld [vmem:[#allocation15 + $0x80] sm:$0xff]  ;;  %v169_v28 = vld [vmem:[#allocation13 + $0x88] sm:$0xff]  ;;  %v170_v31 = vld [vmem:[#allocation13 + $0x90] sm:$0xff] }
  0x8d   :  { %v263_v24 = vadd.f32 %v231_v20, %v167_v22  ;;  %v201_v29 = vld [vmem:[#allocation15 + $0x88] sm:$0xff]  ;;  %v232_v30 = vmul.f32 0.01, %v200_v27  ;;  %v171_v33 = vld [vmem:[#allocation13 + $0x98] sm:$0xff]  ;;  %v202_v34 = vld [vmem:[#allocation15 + $0x90] sm:$0xff] }
  0x8e   :  { %702 = vmatpush3.bf16.msra.mxu1 %v282_v52  ;;  %v286_v18 = vpack.c.bf16 %v261_v15, %v260_v14  ;;  %v233_v32 = vmul.f32 0.01, %v201_v29  ;;  %v203_v35 = vld [vmem:[#allocation15 + $0x98] sm:$0xff]  ;;  %v234_v37 = vmul.f32 0.01, %v202_v34  ;;  %v204_v39 = vld [vmem:[#allocation15 + $0xa0] sm:$0xff] }
  0x8f   :  { %703 = vmatprep.subr.bf16.mxu1 %v964_v0  ;;  %v287_v25 = vpack.c.bf16 %v263_v24, %v262_v23  ;;  %v264_v36 = vadd.f32 %v232_v30, %v168_v26  ;;  %v235_v38 = vmul.f32 0.01, %v203_v35  ;;  %v172_v41 = vld [vmem:[#allocation13 + $0xa0] sm:$0xff]  ;;  %v205_v42 = vld [vmem:[#allocation15 + $0xa8] sm:$0xff]  ;;  %v236_v43 = vmul.f32 0.01, %v204_v39 }
  0x90   :  { %v265_v40 = vadd.f32 %v233_v32, %v169_v28  ;;  %v266_v44 = vadd.f32 %v234_v37, %v170_v31  ;;  %v173_v46 = vld [vmem:[#allocation13 + $0xa8] sm:$0xff]  ;;  %v237_v47 = vmul.f32 0.01, %v205_v42  ;;  %v206_v48 = vld [vmem:[#allocation15 + $0xb0] sm:$0xff]  ;;  %v207_v49 = vld [vmem:[#allocation15 + $0xb8] sm:$0xff] }
  0x91   :  { %v267_v45 = vadd.f32 %v235_v38, %v171_v33  ;;  %v268_v51 = vadd.f32 %v236_v43, %v172_v41  ;;  %v238_v54 = vmul.f32 0.01, %v206_v48  ;;  %v239_v55 = vmul.f32 0.01, %v207_v49  ;;  %v208_v56 = vld [vmem:[#allocation15 + $0xc0] sm:$0xff]  ;;  %v174_v57 = vld [vmem:[#allocation13 + $0xb0] sm:$0xff] }
  0x92   :  { %704 = vmatpush3.bf16.msra.mxu1 %v283_v61  ;;  %v288_v50 = vpack.c.bf16 %v265_v40, %v264_v36  ;;  %v269_v53 = vadd.f32 %v237_v47, %v173_v46  ;;  %v175_v58 = vld [vmem:[#allocation13 + $0xb8] sm:$0xff]  ;;  %v209_v59 = vld [vmem:[#allocation15 + $0xc8] sm:$0xff]  ;;  %v240_v60 = vmul.f32 0.01, %v208_v56  ;;  %v176_v1 = vld [vmem:[#allocation13 + $0xc0] sm:$0xff]  ;;  %v346_v43 = vlaneseq }
  0x93   :  { %705 = vmatprep.subr.bf16.mxu1 %v964_v0  ;;  %v289_v52 = vpack.c.bf16 %v267_v45, %v266_v44  ;;  %v270_v62 = vadd.f32 %v238_v54, %v174_v57  ;;  %v271_v63 = vadd.f32 %v239_v55, %v175_v58  ;;  %v241_v2 = vmul.f32 0.01, %v209_v59  ;;  %v177_v3 = vld [vmem:[#allocation13 + $0xc8] sm:$0xff]  ;;  %v211_v5 = vld [vmem:[#allocation15 + $0xd8] sm:$0xff]  ;;  %v178_v11 = vld [vmem:[#allocation13 + $0xd0] sm:$0xff] }
  0x94   :  { %718 = vmatpush3.bf16.msra.mxu0 %v288_v50  ;;  %v290_v61 = vpack.c.bf16 %v269_v53, %v268_v51  ;;  %v272_v6 = vadd.f32 %v240_v60, %v176_v1  ;;  %v243_v10 = vmul.f32 0.01, %v211_v5  ;;  %v179_v12 = vld [vmem:[#allocation13 + $0xd8] sm:$0xff]  ;;  %v657_v17 = vld [vmem:[#allocation5] ss:$0 sm:$0xff]  ;;  %v180_v29 = vld [vmem:[#allocation13 + $0xe0] sm:$0xff] }
  0x95   :  { %719 = vmatprep.subr.bf16.mxu0 %v964_v0  ;;  %v273_v8 = vadd.f32 %v241_v2, %v177_v3  ;;  %v213_v26 = vld [vmem:[#allocation15 + $0xe8] sm:$0xff]  ;;  %v214_v33 = vld [vmem:[#allocation15 + $0xf0] sm:$0xff]  ;;  %v215_v34 = vld [vmem:[#allocation15 + $0xf8] sm:$0xff]  ;;  %v347_v44 = vshrl.u32 %v346_v43, 7 }
  0x96   :  { %706 = vmatpush3.bf16.msra.mxu1 %v284_v4  ;;  %v210_v4 = vld [vmem:[#allocation15 + $0xd0] sm:$0xff]  ;;  %v275_v15 = vadd.f32 %v243_v10, %v179_v12  ;;  %v245_v28 = vmul.f32 0.01, %v213_v26  ;;  %v181_v30 = vld [vmem:[#allocation13 + $0xe8] sm:$0xff]  ;;  %v246_v36 = vmul.f32 0.01, %v214_v33 }
  0x97   :  { %707 = vmatprep.subr.bf16.mxu1 %v964_v0  ;;  %v242_v9 = vmul.f32 0.01, %v210_v4  ;;  %v292_v13 = vpack.c.bf16 %v273_v8, %v272_v6  ;;  %v247_v37 = vmul.f32 0.01, %v215_v34  ;;  %v182_v38 = vld [vmem:[#allocation13 + $0xf0] sm:$0xff]  ;;  %v183_v39 = vld [vmem:[#allocation13 + $0xf8] sm:$0xff] }
  0x98   :  { %720 = vmatpush3.bf16.msra.mxu0 %v289_v52  ;;  %v277_v32 = vadd.f32 %v245_v28, %v181_v30  ;;  %v278_v40 = vadd.f32 %v246_v36, %v182_v38  ;;  %v1193_v45 = vld [vmem:[%s1250_s7] sm:$0x1]  ;;  %v329_v46 = vld [vmem:[#allocation18] sm:$0xff]  ;;  %v348_v47 = vsub.s32 0, %v347_v44  ;;  %v331_v49 = vld [vmem:[#allocation18 + $0x10] sm:$0xff] }
  0x99   :  { %721 = vmatprep.subr.bf16.mxu0 %v964_v0  ;;  %v274_v14 = vadd.f32 %v242_v9, %v178_v11  ;;  %v279_v41 = vadd.f32 %v247_v37, %v183_v39  ;;  %v330_v48 = vld [vmem:[#allocation18 + $0x8] sm:$0xff]  ;;  %v332_v50 = vld [vmem:[#allocation18 + $0x18] sm:$0xff]  ;;  %v313_v51 = vld [vmem:[#allocation16] sm:$0xff] }
  0x9a   :  { %708 = vmatpush3.bf16.msra.mxu1 %v285_v7  ;;  %v291_v7 = vpack.c.bf16 %v271_v63, %v270_v62  ;;  %v1196_v52 = vrot.slane %v1193_v45, %v348_v47  ;;  %v333_v53 = vld [vmem:[#allocation18 + $0x20] sm:$0xff]  ;;  %v334_v54 = vld [vmem:[#allocation18 + $0x28] sm:$0xff]  ;;  %v315_v56 = vld [vmem:[#allocation16 + $0x10] sm:$0xff] }
  0x9b   :  { %709 = vmatprep.subr.bf16.mxu1 %v964_v0  ;;  %v293_v16 = vpack.c.bf16 %v275_v15, %v274_v14  ;;  %v295_v42 = vpack.c.bf16 %v279_v41, %v278_v40  ;;  %v314_v55 = vld [vmem:[#allocation16 + $0x8] sm:$0xff]  ;;  %v316_v57 = vld [vmem:[#allocation16 + $0x18] sm:$0xff]  ;;  %v335_v5 = vld [vmem:[#allocation18 + $0x30] sm:$0xff] }
  0x9c   :  { %722 = vmatpush3.bf16.msra.mxu0 %v290_v61  ;;  %v351_v58 = vmul.f32 %v1196_v52, %v329_v46  ;;  %v352_v59 = vmul.f32 %v1196_v52, %v330_v48  ;;  %v353_v60 = vmul.f32 %v1196_v52, %v331_v49  ;;  %v354_v61 = vmul.f32 %v1196_v52, %v332_v50  ;;  %v336_v6 = vld [vmem:[#allocation18 + $0x38] sm:$0xff]  ;;  %v318_v8 = vld [vmem:[#allocation16 + $0x28] sm:$0xff]  ;;  %v319_v15 = vld [vmem:[#allocation16 + $0x30] sm:$0xff] }
  0x9d   :  { %723 = vmatprep.subr.bf16.mxu0 %v964_v0  ;;  %v355_v62 = vmul.f32 %v1196_v52, %v333_v53  ;;  %v356_v63 = vmul.f32 %v1196_v52, %v334_v54  ;;  %v357_v10 = vmul.f32 %v1196_v52, %v335_v5  ;;  %v358_v11 = vmul.f32 %v1196_v52, %v336_v6  ;;  %v339_v26 = vld [vmem:[#allocation18 + $0x50] sm:$0xff]  ;;  %v324_v34 = vld [vmem:[#allocation16 + $0x58] sm:$0xff]  ;;  %v659_v39 = vld [vmem:[#allocation5 + $0x1] ss:$0 sm:$0xff] }
  0x9e   :  { %710 = vmatpush3.bf16.msra.mxu1 %v286_v18  ;;  %v367_v1 = vadd.f32 %v351_v58, %v313_v51  ;;  %v368_v2 = vadd.f32 %v352_v59, %v314_v55  ;;  %v369_v3 = vadd.f32 %v353_v60, %v315_v56  ;;  %v370_v4 = vadd.f32 %v354_v61, %v316_v57  ;;  %v323_v33 = vld [vmem:[#allocation16 + $0x50] sm:$0xff]  ;;  %v341_v50 = vld [vmem:[#allocation18 + $0x60] sm:$0xff]  ;;  %v342_v51 = vld [vmem:[#allocation18 + $0x68] sm:$0xff] }
  0x9f   :  { %711 = vmatprep.subr.bf16.mxu1 %v964_v0  ;;  %v372_v14 = vadd.f32 %v356_v63, %v318_v8  ;;  %v363_v53 = vmul.f32 %v1196_v52, %v341_v50  ;;  %v364_v54 = vmul.f32 %v1196_v52, %v342_v51  ;;  %v325_v55 = vld [vmem:[#allocation16 + $0x60] sm:$0xff]  ;;  %v326_v56 = vld [vmem:[#allocation16 + $0x68] sm:$0xff]  ;;  %v343_v59 = vld [vmem:[#allocation18 + $0x70] sm:$0xff] }
  0xa0   :  { %724 = vmatpush3.bf16.msra.mxu0 %v291_v7  ;;  %v317_v7 = vld [vmem:[#allocation16 + $0x20] sm:$0xff]  ;;  %v383_v9 = vpack.c.bf16 %v368_v2, %v367_v1  ;;  %v384_v12 = vpack.c.bf16 %v370_v4, %v369_v3  ;;  %v344_v60 = vld [vmem:[#allocation18 + $0x78] sm:$0xff]  ;;  %v327_v1 = vld [vmem:[#allocation16 + $0x70] sm:$0xff] }
  0xa1   :  { %725 = vmatprep.subr.bf16.mxu0 %v964_v0  ;;  %v379_v57 = vadd.f32 %v363_v53, %v325_v55  ;;  %v380_v58 = vadd.f32 %v364_v54, %v326_v56  ;;  %v366_v63 = vmul.f32 %v1196_v52, %v344_v60  ;;  %v328_v2 = vld [vmem:[#allocation16 + $0x78] sm:$0xff]  ;;  %v404_v6 = vld [vmem:[%s1253_s10] sm:$0x1]  ;;  %s966_s10 = smov [#allocation19]  }
  0xa2   :  { %712 = vmatpush3.bf16.msra.mxu1 %v287_v25  ;;  %v212_v25 = vld [vmem:[#allocation15 + $0xe0] sm:$0xff]  ;;  %s642_s19 = sshll.u32 %s966_s10, 4  ;;  %s643_s19 = int_to_ptr.vmem [resolvable:$true] %s642_s19 }
  0xa3   :  { %737 = vmatprep.subr.bf16.mxu1 %v964_v0  ;;  %v244_v27 = vmul.f32 0.01, %v212_v25  ;;  %v322_v25 = vld [vmem:[#allocation16 + $0x48] sm:$0xff]  ;;  %v389_v61 = vpack.c.bf16 %v380_v58, %v379_v57  ;;  %v382_v4 = vadd.f32 %v366_v63, %v328_v2  ;;  %p928_p1 = scmp.lt.s32.totalorder %s643_s19, %s643_s19 }
  0xa4   :  { %726 = vmatpush3.bf16.msra.mxu0 %v292_v13  ;;  %v371_v13 = vadd.f32 %v355_v62, %v317_v7  ;;  %v365_v62 = vmul.f32 %v1196_v52, %v343_v59  ;;  %v405_v7 = vld [vmem:[%s1254_s11] sm:$0x1]  ;;  %s923_s11 = scalar_lea.vmem %s643_s19, 256 }
  0xa5   :  { %727 = vmatprep.subr.bf16.mxu0 %v964_v0  ;;  %v276_v31 = vadd.f32 %v244_v27, %v180_v29  ;;  %v340_v27 = vld [vmem:[#allocation18 + $0x58] sm:$0xff]  ;;  %v406_v8 = vmul.f32 %v405_v7, %v1193_v45  ;;  %p924_p0 = scmp.ne.s32.totalorder %s643_s19, %s923_s11  ;;  %p929_p2 = scmp.lt.s32.totalorder %s923_s11, %s923_s11 }
  0xa6   :  { %v381_v3 = vadd.f32 %v365_v62, %v327_v1 }
  0xa7   :  { %v294_v35 = vpack.c.bf16 %v277_v32, %v276_v31  ;;  %v361_v31 = vmul.f32 %v1196_v52, %v339_v26  ;;  %v362_v32 = vmul.f32 %v1196_v52, %v340_v27  ;;  %p930_p3 = por %p929_p2, %p928_p1 }
  0xa8   :  { %728 = vmatpush3.bf16.msra.mxu0 %v293_v16  ;;  %v320_v16 = vld [vmem:[#allocation16 + $0x38] sm:$0xff]  ;;  %v390_v5 = vpack.c.bf16 %v382_v4, %v381_v3 }
  0xa9   :  { %729 = vmatprep.subr.bf16.mxu0 %v964_v0  ;;  %v377_v36 = vadd.f32 %v361_v31, %v323_v33  ;;  %v378_v37 = vadd.f32 %v362_v32, %v324_v34  ;;  %p931_p4 = pnand %p930_p3, %p924_p0 }
  0xab   :  { %v388_v38 = vpack.c.bf16 %v378_v37, %v377_v36 }
  0xac   :  { %730 = vmatpush3.bf16.msra.mxu0 %v294_v35 }
  0xad   :  { %731 = vmatprep.subr.bf16.mxu0 %v964_v0 }
  0xb0   :  { %732 = vmatpush3.bf16.msra.mxu0 %v295_v42 }
 0x15a   :  { %v456_v18 = vpop.f32.mrb[0].mxu0 }
 0x15b   :  { %v695_v19 = vpop.f32.mrb[1].mxu0  ;;  %v457_v21 = vadd.f32 %v657_v17, %v456_v18  ;;  %v338_v18 = vld [vmem:[#allocation18 + $0x48] sm:$0xff] }
 0x15c   :  { %v459_v20 = vpop.f32.mrb[2].mxu0  ;;  %v373_v19 = vadd.f32 %v357_v10, %v319_v15 }
 0x15d   :  { %v460_v22 = vadd.f32 %v657_v17, %v459_v20  ;;  %v696_v23 = vpop.f32.mrb[3].mxu0  ;;  %v337_v17 = vld [vmem:[#allocation18 + $0x40] sm:$0xff]  ;;  %v374_v20 = vadd.f32 %v358_v11, %v320_v16 }
 0x15e   :  { %v359_v23 = vmul.f32 %v1196_v52, %v337_v17 }
 0x15f   :  { %v463_v24 = vpack.c.bf16 %v460_v22, %v457_v21  ;;  %v385_v21 = vpack.c.bf16 %v372_v14, %v371_v13  ;;  %v321_v22 = vld [vmem:[#allocation16 + $0x40] sm:$0xff]  ;;  %v386_v28 = vpack.c.bf16 %v374_v20, %v373_v19 }
 0x160   :  { %v375_v29 = vadd.f32 %v359_v23, %v321_v22 }
 0x161   :  { %714 = vmatmul.mubr.bf16.vlgmr.msra.gmra.mrb[0].mxu1 %v463_v24  ;;  %v360_v24 = vmul.f32 %v1196_v52, %v338_v18  ;;  %v407_v52 = vadd.f32 %v406_v8, %v404_v6 }
 0x162   :  { %753 = vmatprep.mubr.msk.bf16.mxu1 %vm965_vm0, %v964_v0  ;;  %738 = vmatpush3.bf16.msra.mxu1 %v383_v9  ;;  %v660_v9 = vld [vmem:[#allocation5 + $0x2] ss:$0 sm:$0xff] }
 0x163   :  { %739 = vmatprep.subr.bf16.mxu1 %v964_v0  ;;  %v376_v30 = vadd.f32 %v360_v24, %v322_v25  ;;  %408 = vst [vmem:[#allocation6] sm:$0x1] %v407_v52 }
 0x165   :  { %v387_v35 = vpack.c.bf16 %v376_v30, %v375_v29 }
 0x166   :  { %740 = vmatpush3.bf16.msra.mxu1 %v384_v12 }
 0x167   :  { %741 = vmatprep.subr.bf16.mxu1 %v964_v0 }
 0x16a   :  { %742 = vmatpush3.bf16.msra.mxu1 %v385_v21  ;;  %v661_v18 = vld [vmem:[#allocation6] ss:$0 sm:$0xff] }
 0x16b   :  { %743 = vmatprep.subr.bf16.mxu1 %v964_v0 }
 0x16e   :  { %744 = vmatpush3.bf16.msra.mxu1 %v386_v28 }
 0x16f   :  { %745 = vmatprep.subr.bf16.mxu1 %v964_v0 }
 0x172   :  { %746 = vmatpush3.bf16.msra.mxu1 %v387_v35 }
 0x173   :  { %747 = vmatprep.subr.bf16.mxu1 %v964_v0 }
 0x176   :  { %748 = vmatpush3.bf16.msra.mxu1 %v388_v38 }
 0x177   :  { %749 = vmatprep.subr.bf16.mxu1 %v964_v0 }
 0x17a   :  { %750 = vmatpush3.bf16.msra.mxu1 %v389_v61 }
 0x17b   :  { %751 = vmatprep.subr.bf16.mxu1 %v964_v0 }
 0x17e   :  { %752 = vmatpush3.bf16.msra.mxu1 %v390_v5 }
 0x234   :  { %v511_v40 = vpop.f32.mrb[0].mxu1 }
 0x235   :  { %v512_v41 = vadd.f32 %v659_v39, %v511_v40  ;;  %v715_v42 = vpop.f32.mrb[1].mxu1 }
 0x236   :  { %v514_v43 = vpop.f32.mrb[2].mxu1 }
 0x237   :  { %v515_v44 = vadd.f32 %v659_v39, %v514_v43  ;;  %v716_v46 = vpop.f32.mrb[3].mxu1  ;;  %v518_v47 = vmax.f32 %v512_v41, 0.0 }
 0x239   :  { %v519_v48 = vmax.f32 %v515_v44, 0.0 }
 0x23b   :  { %v520_v49 = vpack.c.bf16 %v519_v48, %v518_v47 }
 0x23d   :  { %734 = vmatmul.mubr.bf16.vlgmr.msra.gmra.mrb[4].mxu0 %v520_v49 }
 0x310   :  { %v569_v10 = vpop.f32.mrb[4].mxu0 }
 0x311   :  { %v570_v11 = vadd.f32 %v660_v9, %v569_v10  ;;  %v735_v12 = vpop.f32.mrb[5].mxu0 }
 0x312   :  { %v572_v13 = vpop.f32.mrb[6].mxu0 }
 0x313   :  { %v573_v0 = vadd.f32 %v660_v9, %v572_v13  ;;  %v736_v14 = vpop.f32.mrb[7].mxu0  ;;  %v576_v15 = vmax.f32 %v570_v11, 0.0 }
 0x315   :  { %v577_v16 = vmax.f32 %v573_v0, 0.0 }
 0x317   :  { %v578_v17 = vpack.c.bf16 %v577_v16, %v576_v15 }
 0x319   :  { %754 = vmatmul.mubr.bf16.vlgmr.msra.gmra.mrb[4].mxu1 %v578_v17 }
 0x3ec   :  { %v628_v19 = vpop.f32.mrb[4].mxu1 }
 0x3ed   :  { %v629_v20 = vadd.f32 %v661_v18, %v628_v19  ;;  %v755_v21 = vpop.f32.mrb[5].mxu1 }
 0x3ee   :  { %v631_v45 = vpop.f32.mrb[6].mxu1 }
 0x3ef   :  { %635 = vst [vmem:[#allocation19] sm:$0xff] %v629_v20  ;;  %v632_v22 = vadd.f32 %v661_v18, %v631_v45  ;;  %v756_v23 = vpop.f32.mrb[7].mxu1 }
 0x3f1   :  { %636 = vst [vmem:[#allocation19 + $0x8] sm:$0xff] %v632_v22 }
 0x3f2   :  { %934 = shalt.err (!%p931_p4)
}
 0x3f3   :  { %s935_s20 = scalar_lea.hbm %s1255_s12, 256 }
 0x3f4   :  { %p936_p5 = scmp.ne.s32.totalorder %s1255_s12, %s935_s20  ;;  %p939_p6 = scmp.lt.u32.totalorder %s935_s20, %s1255_s12 }
 0x3f6   :  { %p941_p7 = pnand %p939_p6, %p936_p5 }
 0x3f8   :  { %944 = shalt.err (!%p941_p7)
}
 0x3f9   :  { %648 = dma.vmem_to_hbm [thread:$0]  %s643_s19, 256, %s1255_s12, [#allocation9], %s957_s15, %s957_s15, %s958_s16  }
 0x3fa   :  { %953 = dma.done.wait [#allocation9], 256  }
 0x3fb   :  { %954 = vsyncadd [#allocation9], 4294967040 }
 0x3fc   :  { %652 = vsyncpa [#allocation8], 1 }
 0x3fd   :  { %653 = vsyncpa [#allocation11], 1 }
 0x3fe   :  { %654 = vsyncpa [#allocation14], 1 }
 0x3ff   :  { %655 = vsyncpa [#allocation17], 1 }
 0x400   :  { %656 = vsyncpa [#allocation9], 1 }

</bundles_post_ra>
